<compile_context>
chip_gen: v7x
topology: tpu7x:2x2x1
jax: 0.10.0
libtpu: 0.0.40
codegen_flags: <defaults>
</compile_context>

<pallas_src>
import functools
import math

import jax
import jax.numpy as jnp
import numpy as np
from jax.experimental import pallas as pl
from jax.experimental.pallas import tpu as pltpu


# ----------------------------------------------------------------------------
# Sinusoidal table (identical math to the PyTorch module's buffer).
# ----------------------------------------------------------------------------
def _build_pe_table(d_model: int, max_len: int = 5000) -> jnp.ndarray:
    position = np.arange(0, max_len, dtype=np.float32)[:, None]              # (max_len, 1)
    div_term = np.exp(np.arange(0, d_model, 2, dtype=np.float32)
                      * (-np.log(10000.0) / d_model))                        # (ceil(d/2),)
    pe = np.zeros((max_len, d_model), dtype=np.float32)
    pe[:, 0::2] = np.sin(position * div_term)
    pe[:, 1::2] = np.cos(position * div_term[: d_model // 2])
    return jnp.asarray(pe)


# ----------------------------------------------------------------------------
# Kernel body: one packed add per block.
# ----------------------------------------------------------------------------
def _add_pe_kernel(x_ref, pe_ref, o_ref):
    o_ref[...] = x_ref[...] + pe_ref[...]


# ----------------------------------------------------------------------------
# Generation-aware sizing helpers.
# ----------------------------------------------------------------------------
@functools.lru_cache(maxsize=1)
def _device_kind() -> str:
    try:
        return jax.devices()[0].device_kind.lower()
    except Exception:  # pragma: no cover - defensive
        return ""


def _target_block_bytes() -> int:
    kind = _device_kind()
    if "v7" in kind:          # ~3.2 TB/s HBM: bigger steps amortize fixed cost
        return 4 * 1024 * 1024
    if "v6" in kind:          # 32 MiB default scoped VMEM: 3 MiB blocks are free
        return 3 * 1024 * 1024
    return 2 * 1024 * 1024    # v5e & older: stay inside the 16 MiB default scoped VMEM


def _is_multi_tc() -> bool:
    return "v7" in _device_kind()   # 2 TensorCores per chip


def _run_add(x_src, pe_src, *, grid, in_specs, out_specs, dim_sem,
             block_bytes_actual, cost, donate):
    extra = {}
    if donate:
        extra["input_output_aliases"] = {0: 0}     # x_src buffer reused for the output
    vmem_limit = int(min(64 << 20, max(16 << 20, 6 * block_bytes_actual + (4 << 20))))
    return pl.pallas_call(
        _add_pe_kernel,
        out_shape=jax.ShapeDtypeStruct(x_src.shape, x_src.dtype),
        grid=grid,
        in_specs=in_specs,
        out_specs=out_specs,
        compiler_params=pltpu.CompilerParams(
            dimension_semantics=dim_sem,
            vmem_limit_bytes=vmem_limit,
        ),
        cost_estimate=cost,
        **extra,
    )(x_src, pe_src)


# ----------------------------------------------------------------------------
# Module-like wrapper: builds the table once, caches all derived variants.
# ----------------------------------------------------------------------------
class PallasPositionalEncoding:
    def __init__(self, d_model: int, max_len: int = 5000):
        self.d_model = d_model
        self.max_len = max_len
        self.pe = _build_pe_table(d_model, max_len)   # (max_len, d_model) f32 reference
        self._cache = {}                              # derived tables, built once

    # ---- cached table variants (no per-call HBM traffic for the table) ----
    def _pe_cast(self, dtype):
        key = ("cast", jnp.dtype(dtype).name)
        if key not in self._cache:
            self._cache[key] = self.pe.astype(dtype)
        return self._cache[key]

    def _pe_flat(self, dtype):
        """Full table flattened to (N, 128) lane-dense rows (padded once if needed)."""
        key = ("flat", jnp.dtype(dtype).name)
        if key not in self._cache:
            flat = self._pe_cast(dtype).reshape(-1)
            pad = (-flat.shape[0]) % 128
            if pad:
                flat = jnp.concatenate([flat, jnp.zeros((pad,), dtype)])
            self._cache[key] = flat.reshape(-1, 128)
        return self._cache[key]

    def _pe_window(self, dtype, n_rows: int, k: int):
        """First n_rows lane-dense rows (== pe[:S] flattened), tiled k times."""
        key = ("tile", jnp.dtype(dtype).name, n_rows, k)
        if key not in self._cache:
            win = self._pe_flat(dtype)[:n_rows]
            self._cache[key] = jnp.tile(win, (k, 1)) if k > 1 else win
        return self._cache[key]

    def _pe_rows(self, dtype, seq_len: int):
        """pe[:seq_len] in target dtype (fallback, non-lane-aligned D)."""
        key = ("rows", jnp.dtype(dtype).name, seq_len)
        if key not in self._cache:
            self._cache[key] = self._pe_cast(dtype)[:seq_len]
        return self._cache[key]

    # ---- forward -----------------------------------------------------------
    def __call__(self, x: jnp.ndarray, *, donate_x: bool = False) -> jnp.ndarray:
        B, S, D = x.shape
        if D != self.d_model:
            raise ValueError(f"d_model mismatch: {D} vs {self.d_model}")
        if S > self.max_len:
            raise ValueError(f"seq_len {S} exceeds max_len {self.max_len}")

        dtype = x.dtype
        itemsize = jnp.dtype(dtype).itemsize
        sublane = max(8, 32 // itemsize)                   # sublane multiple per dtype
        block_bytes = _target_block_bytes()
        cost = pl.CostEstimate(
            flops=B * S * D,
            transcendentals=0,
            bytes_accessed=(2 * B * S * D + S * D) * itemsize,
        )

        if (S * D) % 128 == 0:
            R = (S * D) // 128                             # lane-dense rows per batch elem
            block_rows = max(sublane, block_bytes // (128 * itemsize))

            fuse = R <= block_rows
            if fuse and B == 1 and _is_multi_tc() and R >= 2 * sublane:
                fuse = False                               # prefer a 2-way row split (2 TCs)

            if fuse:
                # ---- batch-fusion path: pack k whole batches per block ----
                k = min(B, max(1, block_rows // R))
                g = sublane // math.gcd(R, sublane)        # k granule keeping k*R aligned
                if k < B and (k * R) % sublane:
                    k = (k // g) * g                       # may become 0 -> bail below
                if k >= B and B > 1 and _is_multi_tc():
                    k2 = ((((B + 1) // 2) + g - 1) // g) * g
                    if 0 < k2 < B:
                        k = k2                             # >= 2 blocks so both TCs stream
                if k > 0:
                    rows = k * R
                    x_src = x.reshape(B * R, 128)
                    pe_src = self._pe_window(dtype, R, k)  # (k*R, 128), cached
                    out = _run_add(
                        x_src, pe_src,
                        grid=(pl.cdiv(B, k),),
                        in_specs=[pl.BlockSpec((rows, 128), lambda i: (i, 0)),
                                  pl.BlockSpec((rows, 128), lambda i: (0, 0))],
                        out_specs=pl.BlockSpec((rows, 128), lambda i: (i, 0)),
                        dim_sem=("parallel",),
                        block_bytes_actual=rows * 128 * itemsize,
                        cost=cost, donate=donate_x)
                    return out.reshape(B, S, D)

            # ---- row-blocked path: tile rows within each batch element ----
            rows = min(R, block_rows)
            if rows < R:
                rows = max(sublane, (rows // sublane) * sublane)
            if rows == R and B == 1 and _is_multi_tc() and R >= 2 * sublane:
                rows = ((((R + 1) // 2) + sublane - 1) // sublane) * sublane
            if rows == R:
                pe_src = self._pe_window(dtype, R, 1)      # block == full dim (cached)
            else:
                pe_src = self._pe_flat(dtype)              # window via index_map, no copy
            x_src = x.reshape(B, R, 128)
            out = _run_add(
                x_src, pe_src,
                grid=(pl.cdiv(R, rows), B),                # batch innermost: pe re-DMA elided
                in_specs=[pl.BlockSpec((pl.Squeezed(), rows, 128), lambda r, b: (b, r, 0)),
                          pl.BlockSpec((rows, 128), lambda r, b: (r, 0))],
                out_specs=pl.BlockSpec((pl.Squeezed(), rows, 128), lambda r, b: (b, r, 0)),
                dim_sem=("parallel", "parallel"),
                block_bytes_actual=rows * 128 * itemsize,
                cost=cost, donate=donate_x)
            return out.reshape(B, S, D)

        # ---- fallback: S*D not a multiple of 128; keep D as full minor dim ----
        # TODO(synk): route floor(S*D/128)*128 elements through the lane-dense
        # path and handle the tail separately to avoid masked partial stores.
        rows = min(S, max(sublane, block_bytes // max(1, D * itemsize)))
        if rows < S:
            rows = max(sublane, (rows // sublane) * sublane)
        pe_src = self._pe_rows(dtype, S)
        out = _run_add(
            x, pe_src,
            grid=(pl.cdiv(S, rows), B),
            in_specs=[pl.BlockSpec((pl.Squeezed(), rows, D), lambda r, b: (b, r, 0)),
                      pl.BlockSpec((rows, D), lambda r, b: (r, 0))],
            out_specs=pl.BlockSpec((pl.Squeezed(), rows, D), lambda r, b: (b, r, 0)),
            dim_sem=("parallel", "parallel"),
            block_bytes_actual=rows * D * itemsize,
            cost=cost, donate=donate_x)
        return out


if __name__ == "__main__":
    max_len = 5000
    key = jax.random.PRNGKey(0)
    k1, k2, k3 = jax.random.split(key, 3)

    # Case 1: module-consistent small shape (D=32 -> lane-dense batch-fusion path).
    batch, seq_len, d_model = 2, 8, 32
    mod1 = PallasPositionalEncoding(d_model, max_len)
    x1 = jax.random.normal(k1, (batch, seq_len, d_model), dtype=jnp.float32)
    out1 = jax.block_until_ready(mod1(x1))
    ref1 = x1 + mod1.pe[None, :seq_len, :]
    np.testing.assert_allclose(np.asarray(out1), np.asarray(ref1), rtol=1e-6, atol=1e-6)

    # Case 2: D a multiple of 128 (still lane-dense, batch-fusion / row-block path).
    batch2, seq_len2, d_model2 = 2, 16, 128
    mod2 = PallasPositionalEncoding(d_model2, max_len)
    x2 = jax.random.normal(k2, (batch2, seq_len2, d_model2), dtype=jnp.float32)
    out2 = jax.block_until_ready(mod2(x2))
    ref2 = x2 + mod2.pe[None, :seq_len2, :]
    np.testing.assert_allclose(np.asarray(out2), np.asarray(ref2), rtol=1e-6, atol=1e-6)

    # Case 3: S*D not a multiple of 128 (fallback path, D kept as minor dim).
    batch3, seq_len3, d_model3 = 2, 8, 24
    mod3 = PallasPositionalEncoding(d_model3, max_len)
    x3 = jax.random.normal(k3, (batch3, seq_len3, d_model3), dtype=jnp.float32)
    out3 = jax.block_until_ready(mod3(x3))
    ref3 = x3 + mod3.pe[None, :seq_len3, :]
    np.testing.assert_allclose(np.asarray(out3), np.asarray(ref3), rtol=1e-6, atol=1e-6)

    print("KERNEL_OK")
</pallas_src>

<mosaic_0001>
module attributes {stable_mosaic.version = 11 : i64} {
  func.func @_add_pe_kernel(%arg0: i32, %arg1: memref<4x128xf32, #tpu.memory_space<vmem>>, %arg2: memref<4x128xf32, #tpu.memory_space<vmem>>, %arg3: memref<4x128xf32, #tpu.memory_space<vmem>>) attributes {dimension_semantics = [#tpu.dimension_semantics<parallel>], iteration_bounds = array<i64: 1>, scalar_prefetch = 0 : i64, scratch_operands = 0 : i64, tpu.core_type = #tpu.core_type<tc>, window_params = [{transform_indices = @transform_0, window_bounds = array<i64: 4, 128>}, {pipeline_mode = #tpu.pipeline_mode<synchronous>, transform_indices = @transform_1, window_bounds = array<i64: 4, 128>}, {transform_indices = @transform_2, window_bounds = array<i64: 4, 128>}]} {
    %c0 = arith.constant 0 : index
    %c0_0 = arith.constant 0 : index
    %0 = vector.load %arg1[%c0, %c0_0] : memref<4x128xf32, #tpu.memory_space<vmem>>, vector<4x128xf32>
    %c0_1 = arith.constant 0 : index
    %c0_2 = arith.constant 0 : index
    %1 = vector.load %arg2[%c0_1, %c0_2] : memref<4x128xf32, #tpu.memory_space<vmem>>, vector<4x128xf32>
    %2 = arith.addf %0, %1 : vector<4x128xf32>
    %c0_3 = arith.constant 0 : index
    %c0_4 = arith.constant 0 : index
    %3 = vector.load %arg3[%c0_3, %c0_4] : memref<4x128xf32, #tpu.memory_space<vmem>>, vector<4x128xf32>
    tpu.vector_store %arg3[%c0_3, %c0_4], %2 {strides = array<i32>} : memref<4x128xf32, #tpu.memory_space<vmem>>, vector<4x128xf32>,
    return
  }
  func.func @transform_0(%arg0: i32) -> (i32, i32) {
    %c0_i32 = arith.constant 0 : i32
    %c0_i32_0 = arith.constant 0 : i32
    return %arg0, %c0_i32 : i32, i32
  }
  func.func @transform_1(%arg0: i32) -> (i32, i32) {
    %c0_i32 = arith.constant 0 : i32
    %c0_i32_0 = arith.constant 0 : i32
    %c0_i32_1 = arith.constant 0 : i32
    return %c0_i32, %c0_i32_0 : i32, i32
  }
  func.func @transform_2(%arg0: i32) -> (i32, i32) {
    %c0_i32 = arith.constant 0 : i32
    %c0_i32_0 = arith.constant 0 : i32
    return %arg0, %c0_i32 : i32, i32
  }
}

</mosaic_0001>

<bundles_post_ra>
// kernel: tpu_custom_call.1
= control target key start
LH: loop header
LB: loop body
LE: loop exit
PB: predicated region body
PF: predicated region fallthrough
CT: control target
= control target key end

     0   :  { %7 = vsyncpa [#allocation3], 0  ;;  %s185_s0 = inlined_call_operand.hbm [shape: f32[4,128], index: 0, kind: input, shape index: {}]   ;;  %s186_s1 = inlined_call_operand.hbm [shape: f32[4,128], index: 1, kind: input, shape index: {}]   ;;  %s187_s2 = inlined_call_operand.hbm [shape: f32[4,128], index: 2, kind: output, shape index: {}]  }
   0x1   :  { %8 = vsyncpa [#allocation6], 0 }
   0x2   :  { %9 = vsyncpa [#allocation4], 0  ;;  %s131_s9 = smov [#allocation2]   ;;  %s132_s11 = smov [#allocation5]  }
   0x3   :  { %s16_s10 = sshll.u32 %s131_s9, 4  ;;  %s26_s12 = sshll.u32 %s132_s11, 4  ;;  %s17_s10 = int_to_ptr.vmem [resolvable:$true] %s16_s10  ;;  %s27_s12 = int_to_ptr.vmem [resolvable:$true] %s26_s12 }
   0x4   :  { %s59_s15 = scalar_lea.hbm %s185_s0, 64 }
   0x5   :  { %p60_p0 = scmp.ne.s32.totalorder %s185_s0, %s59_s15  ;;  %p63_p1 = scmp.lt.u32.totalorder %s59_s15, %s185_s0 }
   0x7   :  { %p65_p2 = pnand %p63_p1, %p60_p0 }
   0x9   :  { %68 = shalt.err (!%p65_p2)
}
   0xa   :  { %s69_s20 = scalar_lea.vmem %s17_s10, 64  ;;  %p74_p4 = scmp.lt.s32.totalorder %s17_s10, %s17_s10 }
   0xb   :  { %p70_p3 = scmp.ne.s32.totalorder %s17_s10, %s69_s20  ;;  %p75_p5 = scmp.lt.s32.totalorder %s69_s20, %s69_s20 }
   0xd   :  { %p76_p6 = por %p75_p5, %p74_p4 }
   0xf   :  { %p77_p7 = pnand %p76_p6, %p70_p3 }
  0x11   :  { %80 = shalt.err (!%p77_p7)
}
  0x12   :  { %19 = dma.hbm_to_vmem [thread:$0]  %s185_s0, 64, %s17_s10, [#allocation3]  }
  0x13   :  { %s81_s25 = scalar_lea.hbm %s186_s1, 64 }
  0x14   :  { %p82_p8 = scmp.ne.s32.totalorder %s186_s1, %s81_s25  ;;  %p85_p9 = scmp.lt.u32.totalorder %s81_s25, %s186_s1 }
  0x16   :  { %p87_p10 = pnand %p85_p9, %p82_p8 }
  0x18   :  { %90 = shalt.err (!%p87_p10)
}
  0x19   :  { %s91_s30 = scalar_lea.vmem %s27_s12, 64  ;;  %p96_p12 = scmp.lt.s32.totalorder %s27_s12, %s27_s12 }
  0x1a   :  { %p92_p11 = scmp.ne.s32.totalorder %s27_s12, %s91_s30  ;;  %p97_p13 = scmp.lt.s32.totalorder %s91_s30, %s91_s30 }
  0x1c   :  { %p98_p0 = por %p97_p13, %p96_p12 }
  0x1e   :  { %p99_p1 = pnand %p98_p0, %p92_p11 }
  0x20   :  { %102 = shalt.err (!%p99_p1)
}
  0x21   :  { %29 = dma.hbm_to_vmem [thread:$0]  %s186_s1, 64, %s27_s12, [#allocation6]  }
  0x22   :  { %125 = dma.done.wait [#allocation3], 64  }
  0x23   :  { %126 = vsyncadd [#allocation3], 4294967232 }
  0x24   :  { %127 = dma.done.wait [#allocation6], 64  }
  0x25   :  { %128 = vsyncadd [#allocation6], 4294967232  ;;  %s133_s4 = smov [#allocation7]   ;;  %v36_v0 = vld [vmem:[#allocation2] sm:$0xf] }
  0x26   :  { %s46_s5 = sshll.u32 %s133_s4, 4  ;;  %v37_v1 = vld [vmem:[#allocation5] sm:$0xf]  ;;  %s47_s5 = int_to_ptr.vmem [resolvable:$true] %s46_s5 }
  0x27   :  { %v38_v2 = vadd.f32 %v37_v1, %v36_v0  ;;  %s103_s6 = scalar_lea.vmem %s47_s5, 64  ;;  %p108_p3 = scmp.lt.s32.totalorder %s47_s5, %s47_s5 }
  0x28   :  { %p104_p2 = scmp.ne.s32.totalorder %s47_s5, %s103_s6  ;;  %p109_p4 = scmp.lt.s32.totalorder %s103_s6, %s103_s6 }
  0x29   :  { %39 = vst [vmem:[#allocation7] sm:$0xf] %v38_v2 }
  0x2a   :  { %p110_p5 = por %p109_p4, %p108_p3 }
  0x2c   :  { %p111_p6 = pnand %p110_p5, %p104_p2 }
  0x2e   :  { %114 = shalt.err (!%p111_p6)
}
  0x2f   :  { %s115_s8 = scalar_lea.hbm %s187_s2, 64 }
  0x30   :  { %p116_p7 = scmp.ne.s32.totalorder %s187_s2, %s115_s8  ;;  %p119_p8 = scmp.lt.u32.totalorder %s115_s8, %s187_s2 }
  0x32   :  { %p121_p9 = pnand %p119_p8, %p116_p7 }
  0x34   :  { %124 = shalt.err (!%p121_p9)
}
  0x35   :  { %49 = dma.vmem_to_hbm [thread:$0]  %s47_s5, 64, %s187_s2, [#allocation4]  }
  0x36   :  { %129 = dma.done.wait [#allocation4], 64  }
  0x37   :  { %130 = vsyncadd [#allocation4], 4294967232 }
  0x38   :  { %53 = vsyncpa [#allocation3], 1 }
  0x39   :  { %54 = vsyncpa [#allocation6], 1 }
  0x3a   :  { %55 = vsyncpa [#allocation4], 1 }

</bundles_post_ra>
